<compile_context>
chip_gen: v6e
topology: v6e:2x2x1
jax: 0.10.0
libtpu: 0.0.40
codegen_flags: <defaults>
</compile_context>

<pallas_src>
import functools
import inspect
import math

import jax
import jax.numpy as jnp
from jax.experimental import pallas as pl
from jax.experimental.pallas import tpu as pltpu

EPS = 1e-5                       # nn.LayerNorm / nn.BatchNorm1d default eps
MAX_TQ = 256                     # query-tile rows (sized for v7x 64 MiB VMEM)
MAX_TK = 512                     # key/value-tile rows
VMEM_LIMIT = 48 * 1024 * 1024    # <= ~48 MiB so the same config fits v7x


def _supports_pipeline_mode():
    if not hasattr(pl, "Buffered"):
        return False
    try:
        return "pipeline_mode" in inspect.signature(pl.BlockSpec).parameters
    except (TypeError, ValueError):
        return False


_HAS_PIPELINE_MODE = _supports_pipeline_mode()


# --------------------------------------------------------------------------- helpers
def _layernorm(z, g, b):
    mu = jnp.mean(z, axis=-1, keepdims=True)
    var = jnp.mean((z - mu) ** 2, axis=-1, keepdims=True)
    return (z - mu) * jax.lax.rsqrt(var + EPS) * g + b


def _batchnorm_eval(z, g, b, m, v):
    return (z - m) * jax.lax.rsqrt(v + EPS) * g + b


def _gelu_tanh(x):
    # tanh-GELU: tanh runs on the EUP (otherwise idle); max abs error vs exact
    # erf-GELU ~3e-4 — well inside the checked tolerance.
    c = math.sqrt(2.0 / math.pi)
    return 0.5 * x * (1.0 + jnp.tanh(c * (x + 0.044715 * (x * x * x))))


def _pick_tile(n, target):
    """Largest tile <= target that divides n (multiple of 8), else n (full)."""
    if n <= target:
        return n
    for t in range(target, 7, -8):
        if n % t == 0:
            return t
    return n


def _const_spec(shape, ngrid, single_buffer=False):
    """Full-array block, constant index_map (loaded once, never re-DMA'd)."""
    nd = len(shape)
    if ngrid == 2:
        idx = lambda b, i, _n=nd: (0,) * _n
    else:
        idx = lambda b, i, k, _n=nd: (0,) * _n
    if single_buffer and _HAS_PIPELINE_MODE:
        # Constant index_map => double-buffering is pure VMEM waste.
        return pl.BlockSpec(shape, idx, pipeline_mode=pl.Buffered(1))
    return pl.BlockSpec(shape, idx)


# --------------------------------------------------------------------------- kernels
def qkv_kernel(x_ref, ln1_g, ln1_b, wqkv_ref, bqkv_ref, q_ref, kv_ref, *, d_model):
    x = x_ref[0]                                          # (TQ, D) f32
    qn = _layernorm(x, ln1_g[...], ln1_b[...])
    qkv = jnp.dot(qn.astype(wqkv_ref.dtype), wqkv_ref[...],
                  preferred_element_type=jnp.float32) + bqkv_ref[...]
    q_ref[0] = qkv[:, :d_model].astype(q_ref.dtype)       # (TQ, D)
    kv_ref[0] = qkv[:, d_model:].astype(kv_ref.dtype)     # (TQ, 2D)  [K | V]


def attn_ffn_kernel(x_ref, q_ref, kv_ref,
                    wo_ref, bo_ref, ln2_g, ln2_b,
                    w1_ref, b1_ref, bn1_g, bn1_b, bn1_m, bn1_v,
                    w2_ref, b2_ref, bn2_g, bn2_b, bn2_m, bn2_v,
                    fin_g, fin_b,
                    out_ref,
                    m_sc, l_sc, acc_sc,
                    *, heads, d_k, d_model, apply_final_ln):
    ki = pl.program_id(2)
    nk = pl.num_programs(2)

    @pl.when(ki == 0)
    def _init():
        m_sc[...] = jnp.full(m_sc.shape, -jnp.inf, m_sc.dtype)
        l_sc[...] = jnp.zeros(l_sc.shape, l_sc.dtype)
        acc_sc[...] = jnp.zeros(acc_sc.shape, acc_sc.dtype)

    q = q_ref[0]                                          # (TQ, D)  compute dtype
    kv = kv_ref[0]                                        # (TK, 2D) compute dtype
    scale = 1.0 / math.sqrt(d_k)

    # Online-softmax (flash) update, per head.  Heads are static lane slices of
    # the fused lane-dense projections (128-aligned whenever d_k % 128 == 0).
    for h in range(heads):
        sl = slice(h * d_k, (h + 1) * d_k)
        qh = q[:, sl]                                     # (TQ, d_k)
        kh = kv[:, h * d_k:(h + 1) * d_k]                 # (TK, d_k)
        vh = kv[:, d_model + h * d_k:d_model + (h + 1) * d_k]
        s = jax.lax.dot_general(qh, kh, (((1,), (1,)), ((), ())),
                                preferred_element_type=jnp.float32) * scale
        m_prev = m_sc[:, h:h + 1]                         # (TQ, 1)
        m_new = jnp.maximum(m_prev, jnp.max(s, axis=-1, keepdims=True))
        alpha = jnp.exp(m_prev - m_new)
        p = jnp.exp(s - m_new)                            # (TQ, TK) f32
        l_sc[:, h:h + 1] = alpha * l_sc[:, h:h + 1] + jnp.sum(p, axis=-1, keepdims=True)
        acc_sc[:, sl] = alpha * acc_sc[:, sl] + jnp.dot(
            p.astype(vh.dtype), vh, preferred_element_type=jnp.float32)
        m_sc[:, h:h + 1] = m_new

    @pl.when(ki == nk - 1)
    def _finalize():
        inv_l = pl.reciprocal(l_sc[...], approx=True)     # (TQ, heads), EUP
        for h in range(heads):
            sl = slice(h * d_k, (h + 1) * d_k)
            acc_sc[:, sl] = acc_sc[:, sl] * inv_l[:, h:h + 1]
        ctx = acc_sc[...]                                 # (TQ, D) concat-head layout

        # output projection (single full-width matmul) + residual 1
        attn = jnp.dot(ctx.astype(wo_ref.dtype), wo_ref[...],
                       preferred_element_type=jnp.float32) + bo_ref[...]
        x = x_ref[0] + attn
        x2 = _layernorm(x, ln2_g[...], ln2_b[...])

        # FeedForward: Linear -> BatchNorm1d(eval) -> gelu -> Linear -> BatchNorm1d(eval)
        h1 = jnp.dot(x2.astype(w1_ref.dtype), w1_ref[...],
                     preferred_element_type=jnp.float32) + b1_ref[...]
        h1 = _batchnorm_eval(h1, bn1_g[...], bn1_b[...], bn1_m[...], bn1_v[...])
        h1 = _gelu_tanh(h1)
        h2 = jnp.dot(h1.astype(w2_ref.dtype), w2_ref[...],
                     preferred_element_type=jnp.float32) + b2_ref[...]
        h2 = _batchnorm_eval(h2, bn2_g[...], bn2_b[...], bn2_m[...], bn2_v[...])

        y = x + h2                                        # residual 2
        if apply_final_ln:                                # fused final LayerNorm
            y = _layernorm(y, fin_g[...], fin_b[...])
        out_ref[0] = y.astype(out_ref.dtype)


# --------------------------------------------------------------------------- wrappers
def encoder_layer_pallas(x, p, *, heads, d_k, compute_dtype,
                         final_ln, final_g, final_b):
    bs, seq, d_model = x.shape
    tq = _pick_tile(seq, MAX_TQ)
    tk = _pick_tile(seq, MAX_TK)
    n_q, n_kv = seq // tq, seq // tk
    cdt = compute_dtype

    # bf16 (or f32) MXU-operand copies of the large weights; small vectors stay f32.
    wqkv = p['wqkv'].astype(cdt)
    wo = p['wo'].astype(cdt)
    w1 = p['w1'].astype(cdt)
    w2 = p['w2'].astype(cdt)

    # ---- kernel 1: LN1 + fused QKV projection ---------------------------------
    q, kv = pl.pallas_call(
        functools.partial(qkv_kernel, d_model=d_model),
        grid=(bs, n_q),
        out_shape=(jax.ShapeDtypeStruct((bs, seq, d_model), cdt),
                   jax.ShapeDtypeStruct((bs, seq, 2 * d_model), cdt)),
        in_specs=[
            pl.BlockSpec((1, tq, d_model), lambda b, i: (b, i, 0)),     # x
            _const_spec(p['ln1_g'].shape, 2),
            _const_spec(p['ln1_b'].shape, 2),
            _const_spec(wqkv.shape, 2, single_buffer=True),
            _const_spec(p['bqkv'].shape, 2),
        ],
        out_specs=(pl.BlockSpec((1, tq, d_model), lambda b, i: (b, i, 0)),
                   pl.BlockSpec((1, tq, 2 * d_model), lambda b, i: (b, i, 0))),
        compiler_params=pltpu.CompilerParams(
            dimension_semantics=("parallel", "parallel"),
            vmem_limit_bytes=VMEM_LIMIT),
    )(x, p['ln1_g'], p['ln1_b'], wqkv, p['bqkv'])

    # ---- kernel 2: flash attention + out-proj + residual + LN2 + FFN ----------
    kernel = functools.partial(attn_ffn_kernel, heads=heads, d_k=d_k,
                               d_model=d_model, apply_final_ln=final_ln)
    return pl.pallas_call(
        kernel,
        grid=(bs, n_q, n_kv),
        out_shape=jax.ShapeDtypeStruct((bs, seq, d_model), x.dtype),
        in_specs=[
            pl.BlockSpec((1, tq, d_model), lambda b, i, k: (b, i, 0)),      # x (residual)
            pl.BlockSpec((1, tq, d_model), lambda b, i, k: (b, i, 0)),      # q tile
            pl.BlockSpec((1, tk, 2 * d_model), lambda b, i, k: (b, k, 0)),  # kv tile
            _const_spec(wo.shape, 3, single_buffer=True),
            _const_spec(p['bo'].shape, 3),
            _const_spec(p['ln2_g'].shape, 3),
            _const_spec(p['ln2_b'].shape, 3),
            _const_spec(w1.shape, 3, single_buffer=True),
            _const_spec(p['b1'].shape, 3),
            _const_spec(p['bn1_g'].shape, 3),
            _const_spec(p['bn1_b'].shape, 3),
            _const_spec(p['bn1_m'].shape, 3),
            _const_spec(p['bn1_v'].shape, 3),
            _const_spec(w2.shape, 3, single_buffer=True),
            _const_spec(p['b2'].shape, 3),
            _const_spec(p['bn2_g'].shape, 3),
            _const_spec(p['bn2_b'].shape, 3),
            _const_spec(p['bn2_m'].shape, 3),
            _const_spec(p['bn2_v'].shape, 3),
            _const_spec(final_g.shape, 3),
            _const_spec(final_b.shape, 3),
        ],
        out_specs=pl.BlockSpec((1, tq, d_model), lambda b, i, k: (b, i, 0)),
        scratch_shapes=[
            pltpu.VMEM((tq, heads), jnp.float32),      # running max  (per head)
            pltpu.VMEM((tq, heads), jnp.float32),      # running sum  (per head)
            pltpu.VMEM((tq, d_model), jnp.float32),    # attention accumulator
        ],
        compiler_params=pltpu.CompilerParams(
            dimension_semantics=("parallel", "parallel", "arbitrary"),
            vmem_limit_bytes=VMEM_LIMIT),
    )(x, q, kv, wo, p['bo'], p['ln2_g'], p['ln2_b'],
      w1, p['b1'], p['bn1_g'], p['bn1_b'], p['bn1_m'], p['bn1_v'],
      w2, p['b2'], p['bn2_g'], p['bn2_b'], p['bn2_m'], p['bn2_v'],
      final_g, final_b)


def trm_encoder_forward(q, params, *, heads, compute_dtype=jnp.bfloat16):
    # mask=None / self-attention path of TrmEncoder.forward (eval mode).
    d_model = q.shape[-1]
    d_k = d_model // heads
    x = q
    n_layers = len(params['layers'])
    for i, layer_p in enumerate(params['layers']):
        x = encoder_layer_pallas(
            x, layer_p, heads=heads, d_k=d_k, compute_dtype=compute_dtype,
            final_ln=(i == n_layers - 1),                 # fused final LayerNorm
            final_g=params['norm_g'], final_b=params['norm_b'])
    return x


# --------------------------------------------------------------------------- params / reference
def init_params(key, d_model, N, heads, d_ff):
    def linear(k, fan_in, fan_out):
        # PyTorch nn.Linear default init: U(-1/sqrt(fan_in), 1/sqrt(fan_in))
        bound = 1.0 / math.sqrt(fan_in)
        kw, kb = jax.random.split(k)
        w = jax.random.uniform(kw, (fan_out, fan_in), jnp.float32, -bound, bound)
        b = jax.random.uniform(kb, (fan_out,), jnp.float32, -bound, bound)
        return w, b

    layers = []
    for i in range(N):
        ks = jax.random.split(jax.random.fold_in(key, i), 6)
        wq, bq = linear(ks[0], d_model, d_model)
        wk, bk = linear(ks[1], d_model, d_model)
        wv, bv = linear(ks[2], d_model, d_model)
        wo, bo = linear(ks[3], d_model, d_model)
        w1, b1 = linear(ks[4], d_model, d_ff)
        w2, b2 = linear(ks[5], d_ff, d_model)
        layers.append(dict(
            ln1_g=jnp.ones((1, d_model)), ln1_b=jnp.zeros((1, d_model)),
            # lane-dense fused QKV: (D, 3D) = [Wq^T | Wk^T | Wv^T]
            wqkv=jnp.concatenate([wq.T, wk.T, wv.T], axis=1),
            bqkv=jnp.concatenate([bq, bk, bv]).reshape(1, 3 * d_model),
            wo=wo.T, bo=bo.reshape(1, d_model),
            ln2_g=jnp.ones((1, d_model)), ln2_b=jnp.zeros((1, d_model)),
            w1=w1.T, b1=b1.reshape(1, d_ff),
            bn1_g=jnp.ones((1, d_ff)), bn1_b=jnp.zeros((1, d_ff)),
            bn1_m=jnp.zeros((1, d_ff)), bn1_v=jnp.ones((1, d_ff)),
            w2=w2.T, b2=b2.reshape(1, d_model),
            bn2_g=jnp.ones((1, d_model)), bn2_b=jnp.zeros((1, d_model)),
            bn2_m=jnp.zeros((1, d_model)), bn2_v=jnp.ones((1, d_model)),
        ))
    return dict(layers=layers,
                norm_g=jnp.ones((1, d_model)), norm_b=jnp.zeros((1, d_model)))


def ref_forward(x, params, *, heads):
    # Pure-JAX reference mirroring the PyTorch forward (eval mode, exact GELU).
    B, L, D = x.shape
    d_k = D // heads

    def ln(z, g, b):
        mu = z.mean(-1, keepdims=True)
        var = ((z - mu) ** 2).mean(-1, keepdims=True)
        return (z - mu) / jnp.sqrt(var + EPS) * g + b

    def split_heads(t):
        return t.reshape(B, L, heads, d_k).transpose(0, 2, 1, 3)

    with jax.default_matmul_precision("highest"):
        for p in params['layers']:
            qn = ln(x, p['ln1_g'], p['ln1_b'])
            qkv = qn @ p['wqkv'] + p['bqkv']
            q, k, v = qkv[..., :D], qkv[..., D:2 * D], qkv[..., 2 * D:]
            qh, kh, vh = split_heads(q), split_heads(k), split_heads(v)
            s = jnp.einsum('bhqd,bhkd->bhqk', qh, kh) / math.sqrt(d_k)
            pr = jax.nn.softmax(s, axis=-1)
            o = jnp.einsum('bhqk,bhkd->bhqd', pr, vh)
            concat = o.transpose(0, 2, 1, 3).reshape(B, L, D)
            attn = concat @ p['wo'] + p['bo']
            x = x + attn
            x2 = ln(x, p['ln2_g'], p['ln2_b'])
            h1 = x2 @ p['w1'] + p['b1']
            h1 = (h1 - p['bn1_m']) / jnp.sqrt(p['bn1_v'] + EPS) * p['bn1_g'] + p['bn1_b']
            h1 = jax.nn.gelu(h1, approximate=False)
            h2 = h1 @ p['w2'] + p['b2']
            h2 = (h2 - p['bn2_m']) / jnp.sqrt(p['bn2_v'] + EPS) * p['bn2_g'] + p['bn2_b']
            x = x + h2
        return ln(x, params['norm_g'], params['norm_b'])


if __name__ == "__main__":
    bs, seq, d_model, heads, d_ff, N = 2, 8, 32, 4, 64, 2
    key = jax.random.PRNGKey(0)
    kx, kp = jax.random.split(key)
    x = jax.random.normal(kx, (bs, seq, d_model), jnp.float32)
    params = init_params(kp, d_model, N, heads, d_ff)

    ref = ref_forward(x, params, heads=heads)

    # Fast path: bf16 MXU operands, f32 accumulation (v6e/v7x-preferred).
    # Tolerance accounts for bf16 operand rounding + approx reciprocal + tanh GELU.
    out = trm_encoder_forward(x, params, heads=heads, compute_dtype=jnp.bfloat16)
    out = jax.block_until_ready(out)
    assert out.shape == (bs, seq, d_model)
    err_bf16 = float(jnp.max(jnp.abs(out.astype(jnp.float32) - ref)))
    assert err_bf16 < 4e-2, f"bf16-operand path: max abs error {err_bf16}"

    # Tighter semantic check with f32 operands (same kernels, same tiling).
    out_f32 = jax.block_until_ready(
        trm_encoder_forward(x, params, heads=heads, compute_dtype=jnp.float32))
    err_f32 = float(jnp.max(jnp.abs(out_f32 - ref)))
    assert err_f32 < 2e-2, f"f32-operand path: max abs error {err_f32}"

    print("KERNEL_OK")
</pallas_src>

<mosaic_0001>
module attributes {stable_mosaic.version = 11 : i64} {
  func.func @qkv_kernel(%arg0: i32, %arg1: i32, %arg2: memref<1x8x32xf32, #tpu.memory_space<vmem>>, %arg3: memref<1x32xf32, #tpu.memory_space<vmem>>, %arg4: memref<1x32xf32, #tpu.memory_space<vmem>>, %arg5: memref<32x96xbf16, #tpu.memory_space<vmem>>, %arg6: memref<1x96xf32, #tpu.memory_space<vmem>>, %arg7: memref<1x8x32xbf16, #tpu.memory_space<vmem>>, %arg8: memref<1x8x64xbf16, #tpu.memory_space<vmem>>) attributes {dimension_semantics = [#tpu.dimension_semantics<parallel>, #tpu.dimension_semantics<parallel>], iteration_bounds = array<i64: 2, 1>, scalar_prefetch = 0 : i64, scratch_operands = 0 : i64, tpu.core_type = #tpu.core_type<tc>, window_params = [{transform_indices = @transform_0, window_bounds = array<i64: 1, 8, 32>}, {pipeline_mode = #tpu.pipeline_mode<synchronous>, transform_indices = @transform_1, window_bounds = array<i64: 1, 32>}, {pipeline_mode = #tpu.pipeline_mode<synchronous>, transform_indices = @transform_2, window_bounds = array<i64: 1, 32>}, {pipeline_mode = #tpu.pipeline_mode<synchronous>, transform_indices = @transform_3, window_bounds = array<i64: 32, 96>}, {pipeline_mode = #tpu.pipeline_mode<synchronous>, transform_indices = @transform_4, window_bounds = array<i64: 1, 96>}, {transform_indices = @transform_5, window_bounds = array<i64: 1, 8, 32>}, {transform_indices = @transform_6, window_bounds = array<i64: 1, 8, 64>}]} {
    %c0 = arith.constant 0 : index
    %c0_0 = arith.constant 0 : index
    %c0_1 = arith.constant 0 : index
    %0 = vector.load %arg2[%c0, %c0_0, %c0_1] : memref<1x8x32xf32, #tpu.memory_space<vmem>>, vector<1x8x32xf32>
    %1 = vector.shape_cast %0 : vector<1x8x32xf32> to vector<8x32xf32>
    %c0_2 = arith.constant 0 : index
    %c0_3 = arith.constant 0 : index
    %2 = vector.load %arg3[%c0_2, %c0_3] : memref<1x32xf32, #tpu.memory_space<vmem>>, vector<1x32xf32>
    %c0_4 = arith.constant 0 : index
    %c0_5 = arith.constant 0 : index
    %3 = vector.load %arg4[%c0_4, %c0_5] : memref<1x32xf32, #tpu.memory_space<vmem>>, vector<1x32xf32>
    %cst = arith.constant dense<0.000000e+00> : vector<8xf32>
    %4 = vector.multi_reduction <add>, %1, %cst [1] : vector<8x32xf32> to vector<8xf32>
    %5 = vector.shape_cast %4 : vector<8xf32> to vector<8x1xf32>
    %cst_6 = arith.constant 3.200000e+01 : f32
    %6 = vector.broadcast %cst_6 : f32 to vector<8x1xf32>
    %7 = arith.divf %5, %6 : vector<8x1xf32>
    %8 = vector.broadcast %7 : vector<8x1xf32> to vector<8x32xf32>
    %9 = arith.subf %1, %8 : vector<8x32xf32>
    %10 = arith.mulf %9, %9 : vector<8x32xf32>
    %cst_7 = arith.constant dense<0.000000e+00> : vector<8xf32>
    %11 = vector.multi_reduction <add>, %10, %cst_7 [1] : vector<8x32xf32> to vector<8xf32>
    %12 = vector.shape_cast %11 : vector<8xf32> to vector<8x1xf32>
    %cst_8 = arith.constant 3.200000e+01 : f32
    %13 = vector.broadcast %cst_8 : f32 to vector<8x1xf32>
    %14 = arith.divf %12, %13 : vector<8x1xf32>
    %15 = vector.broadcast %7 : vector<8x1xf32> to vector<8x32xf32>
    %16 = arith.subf %1, %15 : vector<8x32xf32>
    %cst_9 = arith.constant 9.99999974E-6 : f32
    %17 = vector.broadcast %cst_9 : f32 to vector<8x1xf32>
    %18 = arith.addf %14, %17 : vector<8x1xf32>
    %19 = math.rsqrt %18 : vector<8x1xf32>
    %20 = vector.broadcast %19 : vector<8x1xf32> to vector<8x32xf32>
    %21 = arith.mulf %16, %20 : vector<8x32xf32>
    %22 = vector.broadcast %2 : vector<1x32xf32> to vector<8x32xf32>
    %23 = arith.mulf %21, %22 : vector<8x32xf32>
    %24 = vector.broadcast %3 : vector<1x32xf32> to vector<8x32xf32>
    %25 = arith.addf %23, %24 : vector<8x32xf32>
    %26 = arith.truncf %25 : vector<8x32xf32> to vector<8x32xbf16>
    %c0_10 = arith.constant 0 : index
    %c0_11 = arith.constant 0 : index
    %27 = vector.load %arg5[%c0_10, %c0_11] : memref<32x96xbf16, #tpu.memory_space<vmem>>, vector<32x96xbf16>
    %cst_12 = arith.constant dense<0.000000e+00> : vector<8x96xf32>
    %28 = tpu.matmul %26, %27, %cst_12 {dimension_numbers = #tpu.dot_dimension_numbers<[1], [0], [0], [1], [0, 0, 1, 1], [], []>} : vector<8x32xbf16>, vector<32x96xbf16>, vector<8x96xf32> -> vector<8x96xf32>
    %c0_13 = arith.constant 0 : index
    %c0_14 = arith.constant 0 : index
    %29 = vector.load %arg6[%c0_13, %c0_14] : memref<1x96xf32, #tpu.memory_space<vmem>>, vector<1x96xf32>
    %30 = vector.broadcast %29 : vector<1x96xf32> to vector<8x96xf32>
    %31 = arith.addf %28, %30 : vector<8x96xf32>
    %32 = vector.extract_strided_slice %31 {offsets = [0, 0], sizes = [8, 32], strides = [1, 1]} : vector<8x96xf32> to vector<8x32xf32>
    %33 = arith.truncf %32 : vector<8x32xf32> to vector<8x32xbf16>
    %c0_15 = arith.constant 0 : index
    %c0_16 = arith.constant 0 : index
    %c0_17 = arith.constant 0 : index
    %34 = vector.load %arg7[%c0_15, %c0_16, %c0_17] : memref<1x8x32xbf16, #tpu.memory_space<vmem>>, vector<1x8x32xbf16>
    %35 = vector.shape_cast %34 : vector<1x8x32xbf16> to vector<8x32xbf16>
    %36 = vector.shape_cast %33 : vector<8x32xbf16> to vector<1x8x32xbf16>
    tpu.vector_store %arg7[%c0_15, %c0_16, %c0_17], %36 {strides = array<i32>} : memref<1x8x32xbf16, #tpu.memory_space<vmem>>, vector<1x8x32xbf16>,
    %37 = vector.extract_strided_slice %31 {offsets = [0, 32], sizes = [8, 64], strides = [1, 1]} : vector<8x96xf32> to vector<8x64xf32>
    %38 = arith.truncf %37 : vector<8x64xf32> to vector<8x64xbf16>
    %c0_18 = arith.constant 0 : index
    %c0_19 = arith.constant 0 : index
    %c0_20 = arith.constant 0 : index
    %39 = vector.load %arg8[%c0_18, %c0_19, %c0_20] : memref<1x8x64xbf16, #tpu.memory_space<vmem>>, vector<1x8x64xbf16>
    %40 = vector.shape_cast %39 : vector<1x8x64xbf16> to vector<8x64xbf16>
    %41 = vector.shape_cast %38 : vector<8x64xbf16> to vector<1x8x64xbf16>
    tpu.vector_store %arg8[%c0_18, %c0_19, %c0_20], %41 {strides = array<i32>} : memref<1x8x64xbf16, #tpu.memory_space<vmem>>, vector<1x8x64xbf16>,
    return
  }
  func.func @transform_0(%arg0: i32, %arg1: i32) -> (i32, i32, i32) {
    %c0_i32 = arith.constant 0 : i32
    %c0_i32_0 = arith.constant 0 : i32
    return %arg0, %arg1, %c0_i32 : i32, i32, i32
  }
  func.func @transform_1(%arg0: i32, %arg1: i32) -> (i32, i32) {
    %c0_i32 = arith.constant 0 : i32
    %c0_i32_0 = arith.constant 0 : i32
    %c0_i32_1 = arith.constant 0 : i32
    return %c0_i32, %c0_i32_0 : i32, i32
  }
  func.func @transform_2(%arg0: i32, %arg1: i32) -> (i32, i32) {
    %c0_i32 = arith.constant 0 : i32
    %c0_i32_0 = arith.constant 0 : i32
    %c0_i32_1 = arith.constant 0 : i32
    return %c0_i32, %c0_i32_0 : i32, i32
  }
  func.func @transform_3(%arg0: i32, %arg1: i32) -> (i32, i32) {
    %c0_i32 = arith.constant 0 : i32
    %c0_i32_0 = arith.constant 0 : i32
    %c0_i32_1 = arith.constant 0 : i32
    return %c0_i32, %c0_i32_0 : i32, i32
  }
  func.func @transform_4(%arg0: i32, %arg1: i32) -> (i32, i32) {
    %c0_i32 = arith.constant 0 : i32
    %c0_i32_0 = arith.constant 0 : i32
    %c0_i32_1 = arith.constant 0 : i32
    return %c0_i32, %c0_i32_0 : i32, i32
  }
  func.func @transform_5(%arg0: i32, %arg1: i32) -> (i32, i32, i32) {
    %c0_i32 = arith.constant 0 : i32
    %c0_i32_0 = arith.constant 0 : i32
    return %arg0, %arg1, %c0_i32 : i32, i32, i32
  }
  func.func @transform_6(%arg0: i32, %arg1: i32) -> (i32, i32, i32) {
    %c0_i32 = arith.constant 0 : i32
    %c0_i32_0 = arith.constant 0 : i32
    return %arg0, %arg1, %c0_i32 : i32, i32, i32
  }
}

</mosaic_0001>

<bundles_post_ra>
// kernel: tpu_custom_call.1
= control target key start
LH: loop header
LB: loop body
LE: loop exit
PB: predicated region body
PF: predicated region fallthrough
CT: control target
= control target key end

     0   :  { %s1140_s0 = inlined_call_operand.hbm [shape: f32[2,8,32], index: 0, kind: input, shape index: {}]   ;;  %s1141_s1 = inlined_call_operand.vmem [shape: f32[1,32], index: 1, kind: input, shape index: {}]   ;;  %s1142_s2 = inlined_call_operand.vmem [shape: f32[1,32], index: 2, kind: input, shape index: {}]   ;;  %s1143_s3 = inlined_call_operand.hbm [shape: bf16[32,96], index: 3, kind: input, shape index: {}]   ;;  %s1144_s4 = inlined_call_operand.vmem [shape: f32[1,96], index: 4, kind: input, shape index: {}]   ;;  %s1145_s5 = inlined_call_operand.hbm [shape: bf16[2,8,32], index: 5, kind: output, shape index: {0}]   ;;  %s1146_s6 = inlined_call_operand.hbm [shape: bf16[2,8,64], index: 6, kind: output, shape index: {1}]  }
   0x1   :  { %1150 = sst [smem:[#allocation16_spill]] %s1143_s3 }
   0x2   :  { %12 = vsyncpa [#allocation3], 0 }
   0x3   :  { %14 = vsyncpa [#allocation3 + $0x1], 0 }
   0x4   :  { %15 = vsyncpa [#allocation6], 0 }
   0x5   :  { %16 = vsyncpa [#allocation4], 0 }
   0x6   :  { %18 = vsyncpa [#allocation4 + $0x1], 0 }
   0x7   :  { %19 = vsyncpa [#allocation9], 0 }
   0x8   :  { %21 = vsyncpa [#allocation9 + $0x1], 0  ;;  %s918_s21 = smov 0   ;;  %s920_s22 = smov 0  }
   0x9   :  { %s922_s23 = smov 0   ;;  %s924_s24 = smov 0  }
   0xa   :  { %s926_s25 = smov 0   ;;  %s928_s26 = smov 0  }
   0xb LB: > { %1151 = sst [smem:[#allocation14_spill]] %s868_s25  ;;  %s580_s27 = sadd.s32 4294967295, %s872_s26   ;;  %s872_s26 = sphi %s928_s26, %s27_s26   ;;  %s868_s25 = sphi %s926_s25, %s1167_s25   ;;  %s864_s24 = sphi %s924_s24, %s1166_s24   ;;  %s860_s23 = sphi %s922_s23, %s1170_s23   ;;  %s856_s22 = sphi %s920_s22, %s1169_s22   ;;  %s852_s21 = sphi %s918_s21, %s1168_s21  }
   0xc   : > { %s581_s28 = sadd.s32 4294967294, %s872_s26   ;;  %p61_p0 = scmp.ne.s32.totalorder %s856_s22, %s852_s21 }
   0xd   : > { %p952_p1 = scmp.eq.s32.totalorder %s580_s27, 0  ;;  %p956_p2 = scmp.eq.s32.totalorder %s580_s27, 1 }
   0xe   : > { %p177_p3 = scmp.eq.s32.totalorder %s581_s28, 1  ;;  %p582_p5 = scmp.ge.s32.totalorder %s872_s26, 1 }
   0xf   : > { %p962_p4 = por %p952_p1, %p61_p0  ;;  %p212_p7 = scmp.lt.s32.totalorder %s872_s26, 3 }
  0x10   : > { %p967_p6 = por %p177_p3, %p61_p0  ;;  %s874_s10 = smov [#allocation5]  }
  0x11   : > { %s1154_s7 = scalar_select %p962_p4, 1, 0 }
  0x12   : > { %s1155_s8 = scalar_select %p967_p6, 1, 0 }
  0x13   : > { %p972_p8 = pnand %p582_p5, %p212_p7  ;;  %s230_s11 = sshll.u32 %s874_s10, 4  ;;  %s231_s11 = int_to_ptr.vmem [resolvable:$true] %s230_s11 }
  0x14   : > { %s39_s13 = sadd.s32 1, %s868_s25  ;;  %s715_s14 = scalar_lea.vmem %s231_s11, 256 }
  0x15   : > { %p627_p9 = pneg %p972_p8  ;;  %p716_p13 = scmp.ne.s32.totalorder %s231_s11, %s715_s14 }
  0x16   : > { %p723_p5 = scmp.lt.s32.totalorder %s231_s11, %s231_s11  ;;  %p724_p7 = scmp.lt.s32.totalorder %s715_s14, %s715_s14 }
  0x17   : > { %p981_p11 = pnand %p627_p9, %p952_p1 }
  0x18   : > { %p725_p6 = por %p724_p7, %p723_p5 }
  0x19   : > { %p706_p12 = pneg %p981_p11 }
  0x1b   : > { %p718_p0 = pnand %p716_p13, %p706_p12 }
  0x1d   : > { %p719_p3 = pneg %p718_p0 }
  0x1f   : > { %p726_p4 = pnand %p725_p6, %p719_p3 }
  0x21   : > { %729 = shalt.err (!%p726_p4)
}
  0x22   : > { %s875_s15 = smov 64   ;;  %s876_s16 = smov 4  }
  0x23   : > { %s1158_s3 = sld [smem:[#allocation16_spill]]  ;;  %p41_p6 = scmp.ge.s32.totalorder %s39_s13, 2 }
  0x24   : > { %s48_s19 = sadd.s32 1, %s860_s23  ;;  %p55_p4 = scmp.ne.s32.totalorder %s860_s23, %s856_s22 }
  0x25   : > { %p56_p9 = scmp.eq.s32.totalorder %s872_s26, 0  ;;  %s1172_s13 = smov (%p41_p6, %s39_s13), 0 }
  0x26   : > { %1159 = sst [smem:[#allocation15_spill]] %s1172_s13  ;;  %p1005_p13 = por %p956_p2, %p55_p4 }
  0x27   : > { %p999_p12 = por %p56_p9, %p55_p4  ;;  %s43_s28 = ssub.s32 %s868_s25, %s1172_s13 }
  0x28   : > { %p643_p0 = scmp.lt.s32.totalorder %s872_s26, 2  ;;  %s247_s10 = sand.u32 1, %s860_s23  }
  0x29   : > { %630 = dma.hbm_to_vmem [thread:$0]  (!%p981_p11), %s1158_s3, 256, %s231_s11, [#allocation6], %s875_s15, %s875_s15, %s876_s16  }
  0x2a   : > { %p46_p11 = scmp.eq.s32.totalorder %s43_s28, 0  ;;  %s585_s11 = sshll.u32 %s247_s10, 3 }
  0x2b   : > { %s586_s14 = sshll.u32 %s868_s25, 7  ;;  %s251_s18 = scalar_lea.vmem [#allocation2], %s585_s11 }
  0x2c   : > { %s1014_s12 = scalar_select %p46_p11, %s860_s23, %s48_s19  }
  0x2d   : > { %s257_s17 = scalar_lea.hbm %s1140_s0, %s586_s14  ;;  %s259_s3 = sshll.u32 %s251_s18, 4  ;;  %s260_s3 = int_to_ptr.vmem [resolvable:$true] %s259_s3 }
  0x2e   : > { %p1022_p2 = pnand %p643_p0, %p999_p12  ;;  %s248_s13 = scalar_lea.sflag [#allocation3], %s247_s10 }
  0x2f   : > { %s743_s28 = scalar_lea.vmem %s260_s3, 128  ;;  %s877_s19 = smov [#allocation2]  }
  0x30   : > { %p732_p3 = pneg %p1022_p2  ;;  %p744_p5 = scmp.ne.s32.totalorder %s260_s3, %s743_s28 }
  0x31   : > { %s748_s25 = sshll.u32 %s877_s19, 4  ;;  %s749_s25 = int_to_ptr.vmem [resolvable:$false] %s748_s25 }
  0x32   : > { %p746_p7 = pnand %p744_p5, %p732_p3  ;;  %s750_s14 = scalar_lea.vmem %s749_s25, 256 }
  0x33   : > { %p751_p4 = scmp.lt.s32.totalorder %s260_s3, %s749_s25  ;;  %p752_p9 = scmp.lt.s32.totalorder %s750_s14, %s743_s28 }
  0x34   : > { %p747_p6 = pneg %p746_p7 }
  0x35   : > { %p753_p11 = por %p752_p9, %p751_p4 }
  0x37   : > { %p754_p10 = pnand %p753_p11, %p747_p6 }
  0x39   : > { %757 = shalt.err (!%p754_p10)
}
  0x3a   : > { %634 = dma.hbm_to_vmem [thread:$0]  (!%p1022_p2), %s257_s17, 128, %s260_s3, %s248_s13  }
  0x3b   : > { %268 = sbr.rel (%p972_p8) target bundleno = 703 (0x2bf), region = 40  ;;  %s1033_s20 = sand.u32 (!%p972_p8), 1, %s856_s22  }
  0x3c   : > { %s588_s10 = sshll.u32 (!%p972_p8), %s1033_s20, 3  ;;  %s271_s11 = scalar_lea.sflag (!%p972_p8), [#allocation3], %s1033_s20 }
  0x3d   : > { %s274_s15 = scalar_lea.vmem (!%p972_p8), [#allocation2], %s588_s10  ;;  %p1163_p12 = scmp.ne.s32.totalorder (!%p972_p8), %s1154_s7, 0 }
  0x40   : > { %835 = dma.done.wait (%p1163_p12), %s271_s11, 128  }
  0x41   : > { %837 = vsyncadd (%p1163_p12), %s271_s11, 4294967168 }
  0x42   : > { %839 = dma.done.wait (%p952_p1), [#allocation6], 256  }
  0x43   : > { %841 = vsyncadd (%p952_p1), [#allocation6], 4294967040  ;;  %vm316_vm0 = vcmask 261120   ;;  %v313_v0 = vld [vmem:[%s274_s15] sm:$0xff]  ;;  %v700_v7 = vld [vmem:[#allocation5 + $0x8] sm:$0xff]   ;;  %v878_v8 = vmov 0.0  }
  0x44   : > { %v317_v1 = vsel %vm316_vm0, %v313_v0, 0.0  ;;  %609 = vmatprep.subr.bf16.mxu0 %v878_v8  ;;  %vm879_vm1 = vmmov 0   ;;  %v701_v9 = vld [vmem:[#allocation5] sm:$0xff]   ;;  %v592_v14 = vld [vmem:[%s1141_s1] ss:$0 sm:$0xff]  ;;  %s590_s9 = sshll.u32 %s1033_s20, 2 }
  0x45   : > { %318 = vadd.xlane.f32.xlu0 %v317_v1  ;;  %613 = vmatprep.mubr.msk.bf16.mxu0 %vm879_vm1, %v878_v8  ;;  %v593_v16 = vld [vmem:[%s1142_s2] ss:$0 sm:$0xff]  ;;  %s601_s17 = sshll.u32 %s864_s24, 6  ;;  %s304_s18 = scalar_lea.vmem [#allocation7], %s590_s9  ;;  %vm413_vm2 = vcmask 257024  }
  0x46   : > { %610 = vmatpush3.bf16.msra.mxu0 %v700_v7  ;;  %v594_v20 = vld [vmem:[%s1144_s4] ss:$0 sm:$0xff]  ;;  %s443_s30 = sshll.u32 %s304_s18, 4  ;;  %s1066_s14 = scalar_lea.hbm %s1145_s5, %s601_s17  ;;  %s1068_s30 = int_to_ptr.vmem [resolvable:$true] %s443_s30 }
  0x47   : > { %611 = vmatprep.subr.bf16.mxu0 %v878_v8  ;;  %s880_s10 = smov 96   ;;  %s424_s11 = scalar_lea.sflag [#allocation4], %s1033_s20 }
  0x48   : > { %s758_s15 = scalar_lea.vmem %s1068_s30, 64  ;;  %s881_s3 = smov [#allocation7]  }
  0x49   : > { %p759_p1 = scmp.ne.s32.totalorder %s1068_s30, %s758_s15  ;;  %s762_s25 = sshll.u32 %s881_s3, 4  ;;  %s763_s25 = int_to_ptr.vmem [resolvable:$false] %s762_s25 }
  0x4a   : > { %612 = vmatpush3.bf16.msra.mxu0 %v701_v9  ;;  %s764_s29 = scalar_lea.vmem %s763_s25, 128  ;;  %p765_p0 = scmp.lt.s32.totalorder %s1068_s30, %s763_s25 }
  0x4b   : > { %p760_p8 = pnand %p759_p1, %p1005_p13  ;;  %p766_p2 = scmp.lt.s32.totalorder %s764_s29, %s758_s15 }
  0x4d   : > { %p761_p10 = pneg %p760_p8  ;;  %p767_p3 = por %p766_p2, %p765_p0 }
  0x4f   : > { %p768_p5 = pnand %p767_p3, %p761_p10 }
  0xce   : > { %v319_v2 = vpop.xlane.xlu0 %318 }
  0xcf   : > { %v321_v3 = vmul.f32 0.03125, %v319_v2 }
  0xd1   : > { %v322_v4 = vsub.f32 %v313_v0, %v321_v3 }
  0xd3   : > { %v323_v5 = vmul.f32 %v322_v4, %v322_v4 }
  0xd5   : > { %v324_v6 = vsel %vm316_vm0, %v323_v5, 0.0 }
  0xd6   : > { %325 = vadd.xlane.f32.xlu0 %v324_v6 }
 0x15f   : > { %v326_v10 = vpop.xlane.xlu0 %325 }
 0x160   : > { %v327_v11 = vmul.f32 0.03125, %v326_v10 }
 0x162   : > { %v328_v12 = vadd.f32 1e-05, %v327_v11 }
 0x164   : > { %702 = vrsqrt.f32 %v328_v12 }
 0x171   : > { %v703_v13 = vpop.eup %702 }
 0x172   : > { %v330_v15 = vmul.f32 %v703_v13, %v322_v4 }
 0x174   : > { %v337_v17 = vmul.f32 %v592_v14, %v330_v15 }
 0x176   : > { %v344_v18 = vadd.f32 %v593_v16, %v337_v17 }
 0x178   : > { %v345_v19 = vpack.c.bf16 %v344_v18, %v344_v18 }
 0x17a   : > { %614 = vmatmul.mubr.msk.bf16.vlgmr.msra.gmra.mxu0 %vm316_vm0, %v345_v19 }
 0x23a   : > { %v406_v21 = vpop.f32.mrf.mxu0 }
 0x23b   : > { %v407_v22 = vadd.f32 %v594_v20, %v406_v21 }
 0x23c   : > { %v615_v23 = vpop.f32.mrf.mxu0 }
 0x23d   : > { %v412_v24 = vpack.c.bf16 %v407_v22, %v407_v22 }
 0x23e   : > { %v409_v25 = vpop.f32.mrf.mxu0 }
 0x23f   : > { %418 = vrot.lane.b32.xlu1 %v412_v24, %s880_s10  ;;  %414 = vst.msk [vmem:[%s304_s18] sm:$0xf] %vm413_vm2, %v412_v24 }
 0x240   : > { %v616_v26 = vpop.f32.mrf.mxu0 }
 0x241   : > { %771 = shalt.err (!%p768_p5)
}
 0x242   : > { %s772_s7 = scalar_lea.hbm %s1066_s14, 64  ;;  %s776_s18 = scalar_lea.hbm %s1145_s5, 128 }
 0x243   : > { %p773_p7 = scmp.ne.s32.totalorder %s1066_s14, %s772_s7  ;;  %p777_p9 = scmp.lt.s32.totalorder %s1066_s14, %s1145_s5 }
 0x244   : > { %p778_p11 = scmp.lt.s32.totalorder %s776_s18, %s772_s7 }
 0x245   : > { %p774_p6 = pnand %p773_p7, %p1005_p13 }
 0x246   : > { %p779_p12 = por %p778_p11, %p777_p9 }
 0x247   : > { %p775_p4 = pneg %p774_p6 }
 0x249   : > { %p780_p1 = pnand %p779_p12, %p775_p4 }
 0x24b   : > { %783 = shalt.err (!%p780_p1)
}
 0x24c   : > { %623 = dma.vmem_to_hbm [thread:$0]  (%p1005_p13), %s1068_s30, 64, %s1066_s14, %s424_s11   ;;  %vm421_vm3 = vcmask 519168  }
 0x24d   : > { %s311_s10 = scalar_lea.vmem [#allocation8], %s590_s9  ;;  %s1098_s29 = scalar_lea.hbm %s1146_s6, %s601_s17 }
 0x24e   : > { %s457_s15 = sshll.u32 %s311_s10, 4  ;;  %s429_s7 = scalar_lea.sflag [#allocation9], %s1033_s20  ;;  %s458_s15 = int_to_ptr.vmem [resolvable:$true] %s457_s15 }
 0x24f   : > { %s784_s13 = scalar_lea.vmem %s458_s15, 64  ;;  %s882_s30 = smov [#allocation8]  }
 0x250   : > { %p785_p8 = scmp.ne.s32.totalorder %s458_s15, %s784_s13  ;;  %s788_s14 = sshll.u32 %s882_s30, 4  ;;  %s789_s14 = int_to_ptr.vmem [resolvable:$false] %s788_s14 }
 0x251   : > { %s790_s9 = scalar_lea.vmem %s789_s14, 128  ;;  %p791_p2 = scmp.lt.s32.totalorder %s458_s15, %s789_s14 }
 0x252   : > { %p786_p10 = pnand %p785_p8, %p1005_p13  ;;  %p792_p3 = scmp.lt.s32.totalorder %s790_s9, %s784_s13 }
 0x254   : > { %p787_p0 = pneg %p786_p10  ;;  %p793_p5 = por %p792_p3, %p791_p2 }
 0x256   : > { %p794_p7 = pnand %p793_p5, %p787_p0 }
 0x2b1   : > { %v419_v27 = vpop.permute.xlu1 %418 }
 0x2b2   : > { %422 = vst.msk [vmem:[%s311_s10] sm:$0xf] %vm421_vm3, %v419_v27 }
 0x2b3   : > { %797 = shalt.err (!%p794_p7)
}
 0x2b4   : > { %s798_s24 = scalar_lea.hbm %s1098_s29, 64  ;;  %s802_s11 = scalar_lea.hbm %s1146_s6, 128 }
 0x2b5   : > { %p799_p6 = scmp.ne.s32.totalorder %s1098_s29, %s798_s24  ;;  %p803_p11 = scmp.lt.s32.totalorder %s1098_s29, %s1146_s6 }
 0x2b6   : > { %p804_p12 = scmp.lt.s32.totalorder %s802_s11, %s798_s24 }
 0x2b7   : > { %p800_p4 = pnand %p799_p6, %p1005_p13 }
 0x2b8   : > { %p805_p1 = por %p804_p12, %p803_p11 }
 0x2b9   : > { %p801_p9 = pneg %p800_p4 }
 0x2bb   : > { %p806_p8 = pnand %p805_p1, %p801_p9 }
 0x2bd   : > { %809 = shalt.err (!%p806_p8)
}
 0x2be   : > { %624 = dma.vmem_to_hbm [thread:$0]  (%p1005_p13), %s458_s15, 64, %s1098_s29, %s429_s7  }
 0x2bf PF: > { %s469_s28 = sand.u32 1, %s852_s21   ;;  %p1164_p10 = scmp.ne.s32.totalorder %s1155_s8, 0 }
 0x2c0   : > { %p1165_p0 = scmp.ge.s32.totalorder %s872_s26, 2  ;;  %s470_s19 = scalar_lea.sflag [#allocation4], %s469_s28 }
 0x2c2   : > { %p636_p2 = pnand %p1165_p0, %p1164_p10 }
 0x2c4   : > { %p637_p3 = pneg %p636_p2 }
 0x2c6   : > { %843 = dma.done.wait (%p637_p3), %s470_s19, 64  }
 0x2c7   : > { %845 = vsyncadd (%p637_p3), %s470_s19, 4294967232  ;;  %s479_s10 = scalar_lea.sflag [#allocation9], %s469_s28 }
 0x2c8   : > { %847 = dma.done.wait (%p637_p3), %s479_s10, 64  }
 0x2c9   : > { %849 = vsyncadd (%p637_p3), %s479_s10, 4294967232  ;;  %s27_s26 = sadd.s32 1, %s872_s26   ;;  %s1166_s24 = sld [smem:[#allocation14_spill]] }
 0x2ca   : > { %p24_p5 = scmp.ge.s32.totalorder %s27_s26, 4   ;;  %s1167_s25 = sld [smem:[#allocation15_spill]] }
 0x2cb   : > { %s1168_s21 = smov %s856_s22  ;;  %s1169_s22 = smov %s860_s23 }
 0x2cc   : > { %s1170_s23 = smov %s1014_s12  ;;  %26 = sbr.rel (!%p24_p5) target bundleno = 11 (0xb), region = 106 }
 0x2d1   :  { %484 = vsyncpa [#allocation3], 1 }
 0x2d2   :  { %486 = vsyncpa [#allocation3 + $0x1], 1 }
 0x2d3   :  { %487 = vsyncpa [#allocation6], 1 }
 0x2d4   :  { %488 = vsyncpa [#allocation4], 1 }
 0x2d5   :  { %490 = vsyncpa [#allocation4 + $0x1], 1 }
 0x2d6   :  { %491 = vsyncpa [#allocation9], 1 }
 0x2d7   :  { %493 = vsyncpa [#allocation9 + $0x1], 1 }

</bundles_post_ra>
